<compile_context>
chip_gen: v7x
topology: tpu7x:2x2x1
jax: 0.10.0
libtpu: 0.0.40
codegen_flags: <defaults>
</compile_context>

<pallas_src>
import jax
import jax.numpy as jnp
import numpy as np
from jax.experimental import pallas as pl
from jax.experimental.pallas import tpu as pltpu


def _make_kernel(*, ignore_label, num_pixels, tile, has_cw, has_sw,
                 write_losses, write_sums):
    """Builds a kernel specialized on which optional refs are present."""
    needs_tail_mask = (num_pixels % tile) != 0

    def kernel(*refs):
        it = iter(refs)
        logits_ref = next(it)                          # (C, tile)  native dtype
        labels_ref = next(it)                          # (1, tile)  native int
        semw_ref = next(it) if has_sw else None        # (1, tile)  native dtype
        cw_ref = next(it) if has_cw else None          # (C, 1)     f32
        loss_ref = next(it) if write_losses else None  # (1, tile)  f32
        sums_ref = next(it) if write_sums else None    # (1, 128)   f32

        x = logits_ref[...].astype(jnp.float32)        # (C, tile)
        lab = labels_ref[...].astype(jnp.int32)        # (1, tile)

        # numerically stable log-sum-exp over the class (sublane) axis
        m = jnp.max(x, axis=0, keepdims=True)                              # (1, tile)
        lse = jnp.log(jnp.sum(jnp.exp(x - m), axis=0, keepdims=True)) + m  # (1, tile)

        # one-hot select of x[label] (and class_weight[label]); the remaining
        # arithmetic runs on (1, tile) rows to keep (C, tile) VALU passes low.
        cls = jax.lax.broadcasted_iota(jnp.int32, x.shape, 0)
        onehot = cls == lab                                                 # (C, tile)
        x_lab = jnp.sum(jnp.where(onehot, x, 0.0), axis=0, keepdims=True)   # (1, tile)
        loss = lse - x_lab
        if has_cw:
            cw_lab = jnp.sum(jnp.where(onehot, cw_ref[...], 0.0),
                             axis=0, keepdims=True)                         # (1, tile)
            loss = loss * cw_lab
        if has_sw:
            loss = loss * semw_ref[...].astype(jnp.float32)

        # Mask ignored labels (and the padded tail of the last pixel tile).
        # This select MUST stay ahead of any reduction so inf/NaN from the
        # padded garbage lanes cannot leak into the partial sums.
        valid = lab != ignore_label
        if needs_tail_mask:
            pos = (pl.program_id(1) * tile
                   + jax.lax.broadcasted_iota(jnp.int32, lab.shape, 1))
            valid = jnp.logical_and(valid, pos < num_pixels)
        loss = jnp.where(valid, loss, 0.0)

        if write_losses:
            loss_ref[...] = loss
        if write_sums:
            # Disjoint per-(batch, tile) partial sum; lane 0 carries the value.
            part = jnp.sum(loss, axis=1, keepdims=True)                     # (1, 1)
            lane = jax.lax.broadcasted_iota(jnp.int32, sums_ref.shape, 1)
            sums_ref[...] = jnp.where(lane == 0, part, 0.0)                 # (1, 128)

    return kernel


def _pick_tile_and_vmem(requested_tile, num_classes, hw, in_dtype):
    """Pixel-tile size + scoped-VMEM limit, gated on the local chip."""
    vmem_cap = 128 << 20
    is_v5 = False
    try:
        info = pltpu.get_tpu_info()
        vmem_cap = int(getattr(info, "vmem_capacity_bytes", vmem_cap))
    except Exception:
        pass
    try:
        is_v5 = "v5" in jax.devices()[0].device_kind.lower()
    except Exception:
        pass

    if requested_tile is None:
        in_bytes = np.dtype(in_dtype).itemsize
        cpad = -(-num_classes // 8) * 8
        # Per-lane VMEM bytes: double-buffered logits stream + ~4 live f32
        # (C, tile) intermediates + padded (1, tile) label/semw/loss streams.
        per_lane = 2 * cpad * in_bytes + 4 * cpad * 4 + 8 * 8 * 4
        budget = min(vmem_cap // 3, 40 << 20)
        tile = (budget // per_lane) // 128 * 128
        # v7x (64 MiB VMEM) practical ceiling ~32K lanes; v5e's slower HBM
        # already exceeds the per-step overhead near 16K lanes.
        tile = min(tile, 16384 if is_v5 else 32768)
        tile = max(tile, 1024)
    else:
        tile = max(128, (int(requested_tile) // 128) * 128)

    # Never allocate more lanes than the (128-rounded) pixel count.
    tile = min(tile, -(-hw // 128) * 128)
    vmem_limit = int(max(min(vmem_cap * 3 // 4, 100 << 20), 32 << 20))
    return tile, vmem_limit


def deeplab_ce(logits, labels, *, ignore_label=-1, top_k_percent_pixels=1.0,
               weight=None, semantic_weights=None, tile=None):
    """Pallas implementation of DeepLabCE.forward."""
    N, C, H, W = logits.shape
    HW = H * W
    P = N * HW

    # Free reshapes only — no transpose, no dtype cast (stream native dtypes).
    x = logits.reshape(N, C, HW)
    lab = labels.reshape(N, 1, HW)

    has_sw = semantic_weights is not None
    has_cw = weight is not None

    tile, vmem_limit = _pick_tile_and_vmem(tile, C, HW, logits.dtype)
    grid_i = pl.cdiv(HW, tile)

    write_losses = top_k_percent_pixels != 1.0
    write_sums = not write_losses

    inputs = [x, lab]
    in_specs = [
        pl.BlockSpec((pl.Squeezed(), C, tile), lambda n, i: (n, 0, i)),
        pl.BlockSpec((pl.Squeezed(), 1, tile), lambda n, i: (n, 0, i)),
    ]
    if has_sw:
        inputs.append(semantic_weights.reshape(N, 1, HW))   # native dtype
        in_specs.append(
            pl.BlockSpec((pl.Squeezed(), 1, tile), lambda n, i: (n, 0, i)))
    if has_cw:
        inputs.append(jnp.asarray(weight, jnp.float32).reshape(C, 1))
        in_specs.append(pl.BlockSpec((C, 1), lambda n, i: (0, 0)))

    out_shape = []
    out_specs = []
    if write_losses:
        out_shape.append(jax.ShapeDtypeStruct((N, 1, HW), jnp.float32))
        out_specs.append(
            pl.BlockSpec((pl.Squeezed(), 1, tile), lambda n, i: (n, 0, i)))
    if write_sums:
        # Per-(batch, tile) partial sums in disjoint, lane-aligned blocks so
        # both grid axes stay "parallel" (v7x megacore friendly).
        out_shape.append(
            jax.ShapeDtypeStruct((N, 1, 128 * grid_i), jnp.float32))
        out_specs.append(
            pl.BlockSpec((pl.Squeezed(), 1, 128), lambda n, i: (n, 0, i)))

    kernel = _make_kernel(
        ignore_label=ignore_label, num_pixels=HW, tile=tile,
        has_cw=has_cw, has_sw=has_sw,
        write_losses=write_losses, write_sums=write_sums)

    outs = pl.pallas_call(
        kernel,
        out_shape=tuple(out_shape),
        grid_spec=pltpu.PrefetchScalarGridSpec(
            num_scalar_prefetch=0,
            grid=(N, grid_i),
            in_specs=in_specs,
            out_specs=tuple(out_specs),
        ),
        compiler_params=pltpu.CompilerParams(
            dimension_semantics=("parallel", "parallel"),
            vmem_limit_bytes=vmem_limit),
    )(*inputs)
    if not isinstance(outs, (tuple, list)):
        outs = (outs,)

    if write_sums:
        # mean over ALL pixels (ignored pixels contribute exact zeros), like
        # nn.CrossEntropyLoss(reduction='none').mean()
        return jnp.sum(outs[0]) / P

    # TODO(synk): per-tile top-k candidate pre-selection (in-kernel) has no clean
    # Pallas TPU primitive (no sort/top_k lowering); full top-k stays in plain JAX.
    pixel_losses = outs[0].reshape(-1)              # (N*HW,)
    k = max(int(top_k_percent_pixels * P), 1)
    topk_vals, _ = jax.lax.top_k(pixel_losses, k)
    return jnp.mean(topk_vals)


def _reference_deeplab_ce(logits, labels, *, ignore_label=-1,
                          top_k_percent_pixels=1.0, weight=None,
                          semantic_weights=None):
    """Pure-JAX reference mirroring the PyTorch module semantics."""
    logp = jax.nn.log_softmax(logits.astype(jnp.float32), axis=1)
    valid = labels != ignore_label
    safe = jnp.where(valid, labels, 0).astype(jnp.int32)
    sel = jnp.take_along_axis(logp, safe[:, None], axis=1)[:, 0]
    loss = -sel
    if weight is not None:
        loss = loss * jnp.asarray(weight, jnp.float32)[safe]
    loss = jnp.where(valid, loss, 0.0)
    if semantic_weights is not None:
        loss = loss * semantic_weights.astype(jnp.float32)
    loss = loss.reshape(-1)
    if top_k_percent_pixels == 1.0:
        return loss.mean()
    k = max(int(top_k_percent_pixels * loss.size), 1)
    return jax.lax.top_k(loss, k)[0].mean()


if __name__ == "__main__":
    key = jax.random.PRNGKey(0)
    k_logits, k_labels, k_sw = jax.random.split(key, 3)

    N, C, H, W = 2, 4, 16, 16
    logits = jax.random.normal(k_logits, (N, C, H, W), dtype=jnp.float32)
    # labels in [-1, C-1]; -1 is the ignore label
    labels = jax.random.randint(k_labels, (N, H, W), -1, C, dtype=jnp.int32)

    # Case 1: top_k_percent_pixels == 1.0 (plain mean over all pixels)
    out_full = jax.block_until_ready(
        deeplab_ce(logits, labels, ignore_label=-1, top_k_percent_pixels=1.0))
    ref_full = jax.block_until_ready(
        _reference_deeplab_ce(logits, labels, ignore_label=-1,
                              top_k_percent_pixels=1.0))
    np.testing.assert_allclose(np.asarray(out_full), np.asarray(ref_full),
                               rtol=1e-5, atol=1e-5)

    # Case 2: hard pixel mining, top 25% of pixels
    out_topk = jax.block_until_ready(
        deeplab_ce(logits, labels, ignore_label=-1, top_k_percent_pixels=0.25))
    ref_topk = jax.block_until_ready(
        _reference_deeplab_ce(logits, labels, ignore_label=-1,
                              top_k_percent_pixels=0.25))
    np.testing.assert_allclose(np.asarray(out_topk), np.asarray(ref_topk),
                               rtol=1e-5, atol=1e-5)

    # Case 3: class weights + semantic weights + top 50% of pixels
    class_w = jnp.array([0.5, 1.0, 2.0, 1.5], dtype=jnp.float32)
    sem_w = jax.random.uniform(k_sw, (N, H, W), minval=0.5, maxval=1.5,
                               dtype=jnp.float32)
    out_w = jax.block_until_ready(
        deeplab_ce(logits, labels, ignore_label=-1, top_k_percent_pixels=0.5,
                   weight=class_w, semantic_weights=sem_w))
    ref_w = jax.block_until_ready(
        _reference_deeplab_ce(logits, labels, ignore_label=-1,
                              top_k_percent_pixels=0.5, weight=class_w,
                              semantic_weights=sem_w))
    np.testing.assert_allclose(np.asarray(out_w), np.asarray(ref_w),
                               rtol=1e-5, atol=1e-5)

    print("KERNEL_OK")
</pallas_src>

<mosaic_0001>
module attributes {stable_mosaic.version = 11 : i64} {
  func.func @kernel(%arg0: i32, %arg1: i32, %arg2: memref<1x4x256xf32, #tpu.memory_space<vmem>>, %arg3: memref<1x1x256xi32, #tpu.memory_space<vmem>>, %arg4: memref<1x1x128xf32, #tpu.memory_space<vmem>>) attributes {dimension_semantics = [#tpu.dimension_semantics<parallel>, #tpu.dimension_semantics<parallel>], iteration_bounds = array<i64: 2, 1>, scalar_prefetch = 0 : i64, scratch_operands = 0 : i64, tpu.core_type = #tpu.core_type<tc>, window_params = [{transform_indices = @transform_0, window_bounds = array<i64: 1, 4, 256>}, {transform_indices = @transform_1, window_bounds = array<i64: 1, 1, 256>}, {transform_indices = @transform_2, window_bounds = array<i64: 1, 1, 128>}]} {
    %c0 = arith.constant 0 : index
    %c0_0 = arith.constant 0 : index
    %c0_1 = arith.constant 0 : index
    %0 = vector.load %arg2[%c0, %c0_0, %c0_1] : memref<1x4x256xf32, #tpu.memory_space<vmem>>, vector<1x4x256xf32>
    %1 = vector.shape_cast %0 : vector<1x4x256xf32> to vector<4x256xf32>
    %c0_2 = arith.constant 0 : index
    %c0_3 = arith.constant 0 : index
    %c0_4 = arith.constant 0 : index
    %2 = vector.load %arg3[%c0_2, %c0_3, %c0_4] : memref<1x1x256xi32, #tpu.memory_space<vmem>>, vector<1x1x256xi32>
    %3 = vector.shape_cast %2 : vector<1x1x256xi32> to vector<1x256xi32>
    %cst = arith.constant dense<0xFF800000> : vector<256xf32>
    %4 = vector.multi_reduction <maximumf>, %1, %cst [0] : vector<4x256xf32> to vector<256xf32>
    %5 = vector.shape_cast %4 : vector<256xf32> to vector<1x256xf32>
    %6 = vector.broadcast %5 : vector<1x256xf32> to vector<4x256xf32>
    %7 = arith.subf %1, %6 : vector<4x256xf32>
    %8 = math.exp %7 : vector<4x256xf32>
    %cst_5 = arith.constant dense<0.000000e+00> : vector<256xf32>
    %9 = vector.multi_reduction <add>, %8, %cst_5 [0] : vector<4x256xf32> to vector<256xf32>
    %10 = vector.shape_cast %9 : vector<256xf32> to vector<1x256xf32>
    %11 = math.log %10 : vector<1x256xf32>
    %12 = arith.addf %11, %5 : vector<1x256xf32>
    %13 = tpu.iota {dimensions = array<i32: 0>} : vector<4x256xi32>
    %14 = vector.broadcast %3 : vector<1x256xi32> to vector<4x256xi32>
    %15 = arith.cmpi eq, %13, %14 : vector<4x256xi32>
    %cst_6 = arith.constant 0.000000e+00 : f32
    %16 = vector.broadcast %cst_6 : f32 to vector<4x256xf32>
    %17 = arith.select %15, %1, %16 : vector<4x256xi1>, vector<4x256xf32>
    %cst_7 = arith.constant dense<0.000000e+00> : vector<256xf32>
    %18 = vector.multi_reduction <add>, %17, %cst_7 [0] : vector<4x256xf32> to vector<256xf32>
    %19 = vector.shape_cast %18 : vector<256xf32> to vector<1x256xf32>
    %20 = arith.subf %12, %19 : vector<1x256xf32>
    %c-1_i32 = arith.constant -1 : i32
    %21 = vector.broadcast %c-1_i32 : i32 to vector<1x256xi32>
    %22 = arith.cmpi ne, %3, %21 : vector<1x256xi32>
    %cst_8 = arith.constant 0.000000e+00 : f32
    %23 = vector.broadcast %cst_8 : f32 to vector<1x256xf32>
    %24 = arith.select %22, %20, %23 : vector<1x256xi1>, vector<1x256xf32>
    %cst_9 = arith.constant dense<0.000000e+00> : vector<1xf32>
    %25 = vector.multi_reduction <add>, %24, %cst_9 [1] : vector<1x256xf32> to vector<1xf32>
    %26 = vector.shape_cast %25 : vector<1xf32> to vector<1x1xf32>
    %27 = tpu.iota {dimensions = array<i32: 1>} : vector<1x128xi32>
    %c0_i32 = arith.constant 0 : i32
    %28 = vector.broadcast %c0_i32 : i32 to vector<1x128xi32>
    %29 = arith.cmpi eq, %27, %28 : vector<1x128xi32>
    %cst_10 = arith.constant 0.000000e+00 : f32
    %30 = vector.shape_cast %26 : vector<1x1xf32> to vector<1x1xf32>
    %31 = vector.broadcast %30 : vector<1x1xf32> to vector<1x128xf32>
    %32 = vector.broadcast %cst_10 : f32 to vector<1x128xf32>
    %33 = arith.select %29, %31, %32 : vector<1x128xi1>, vector<1x128xf32>
    %c0_11 = arith.constant 0 : index
    %c0_12 = arith.constant 0 : index
    %c0_13 = arith.constant 0 : index
    %34 = vector.load %arg4[%c0_11, %c0_12, %c0_13] : memref<1x1x128xf32, #tpu.memory_space<vmem>>, vector<1x1x128xf32>
    %35 = vector.shape_cast %34 : vector<1x1x128xf32> to vector<1x128xf32>
    %36 = vector.shape_cast %33 : vector<1x128xf32> to vector<1x1x128xf32>
    tpu.vector_store %arg4[%c0_11, %c0_12, %c0_13], %36 {strides = array<i32>} : memref<1x1x128xf32, #tpu.memory_space<vmem>>, vector<1x1x128xf32>,
    return
  }
  func.func @transform_0(%arg0: i32, %arg1: i32) -> (i32, i32, i32) {
    %c0_i32 = arith.constant 0 : i32
    %c0_i32_0 = arith.constant 0 : i32
    return %arg0, %c0_i32, %arg1 : i32, i32, i32
  }
  func.func @transform_1(%arg0: i32, %arg1: i32) -> (i32, i32, i32) {
    %c0_i32 = arith.constant 0 : i32
    %c0_i32_0 = arith.constant 0 : i32
    return %arg0, %c0_i32, %arg1 : i32, i32, i32
  }
  func.func @transform_2(%arg0: i32, %arg1: i32) -> (i32, i32, i32) {
    %c0_i32 = arith.constant 0 : i32
    %c0_i32_0 = arith.constant 0 : i32
    return %arg0, %c0_i32, %arg1 : i32, i32, i32
  }
}

</mosaic_0001>

<bundles_post_ra>
// kernel: tpu_custom_call.1
= control target key start
LH: loop header
LB: loop body
LE: loop exit
PB: predicated region body
PF: predicated region fallthrough
CT: control target
= control target key end

     0   :  { %7 = vsyncpa [#allocation3], 0  ;;  %s952_s0 = inlined_call_operand.hbm [shape: f32[2,4,256], index: 0, kind: input, shape index: {}]   ;;  %s953_s1 = inlined_call_operand.hbm [shape: s32[2,1,256], index: 1, kind: input, shape index: {}]   ;;  %s954_s2 = inlined_call_operand.hbm [shape: f32[2,1,128], index: 2, kind: output, shape index: {}]  }
   0x1   :  { %9 = vsyncpa [#allocation3 + $0x1], 0 }
   0x2   :  { %10 = vsyncpa [#allocation6], 0 }
   0x3   :  { %12 = vsyncpa [#allocation6 + $0x1], 0 }
   0x4   :  { %13 = vsyncpa [#allocation4], 0 }
   0x5   :  { %15 = vsyncpa [#allocation4 + $0x1], 0  ;;  %s721_s9 = smov 0   ;;  %s723_s10 = smov 0  }
   0x6   :  { %s725_s11 = smov 0   ;;  %s727_s12 = smov 0  }
   0x7   :  { %s729_s13 = smov 0   ;;  %s731_s14 = smov 0  }
   0x8 LB: > { %s461_s15 = sadd.s32 4294967295, %s700_s14   ;;  %s462_s16 = sadd.s32 4294967294, %s700_s14   ;;  %s700_s14 = sphi %s731_s14, %s21_s14   ;;  %s696_s13 = sphi %s729_s13, %s974_s13   ;;  %s692_s12 = sphi %s727_s12, %s973_s12   ;;  %s688_s11 = sphi %s725_s11, %s972_s11   ;;  %s684_s10 = sphi %s723_s10, %s971_s10   ;;  %s680_s9 = sphi %s721_s9, %s970_s9  }
   0x9   : > { %s33_s17 = sadd.s32 1, %s696_s13  ;;  %s42_s18 = sadd.s32 1, %s688_s11 }
   0xa   : > { %p35_p0 = scmp.ge.s32.totalorder %s33_s17, 2  ;;  %p49_p1 = scmp.ne.s32.totalorder %s688_s11, %s684_s10 }
   0xb   : > { %p50_p2 = scmp.eq.s32.totalorder %s700_s14, 0  ;;  %p55_p3 = scmp.ne.s32.totalorder %s684_s10, %s680_s9 }
   0xc   : > { %s976_s17 = smov (%p35_p0, %s33_s17), 0  ;;  %p56_p5 = scmp.eq.s32.totalorder %s461_s15, 0 }
   0xd   : > { %p762_p4 = por %p50_p2, %p49_p1  ;;  %s37_s20 = ssub.s32 %s696_s13, %s976_s17 }
   0xe   : > { %p109_p6 = scmp.eq.s32.totalorder %s461_s15, 1  ;;  %p40_p7 = scmp.eq.s32.totalorder %s37_s20, 0 }
   0xf   : > { %p768_p8 = por %p56_p5, %p55_p3  ;;  %p115_p10 = scmp.eq.s32.totalorder %s462_s16, 1 }
  0x10   : > { %p772_p9 = por %p109_p6, %p49_p1  ;;  %p496_p13 = scmp.lt.s32.totalorder %s700_s14, 2 }
  0x11   : > { %s958_s21 = scalar_select %p768_p8, 1, 0 }
  0x12   : > { %s959_s22 = scalar_select %p772_p9, 1, 0 }
  0x13   : > { %s777_s23 = scalar_select %p40_p7, %s688_s11, %s42_s18  }
  0x14   : > { %p779_p11 = por %p115_p10, %p55_p3  ;;  %s786_s25 = sand.u32 1, %s688_s11  }
  0x15   : > { %s465_s26 = sshll.u32 %s786_s25, 3  ;;  %s477_s27 = sshll.u32 %s696_s13, 7 }
  0x16   : > { %s960_s24 = scalar_select %p779_p11, 1, 0 }
  0x17   : > { %s793_s30 = scalar_lea.hbm %s952_s0, %s477_s27  ;;  %s139_s3 = scalar_lea.vmem [#allocation2], %s465_s26 }
  0x18   : > { %s149_s4 = sshll.u32 %s139_s3, 4  ;;  %p799_p0 = pnand %p496_p13, %p762_p4  ;;  %s795_s4 = int_to_ptr.vmem [resolvable:$true] %s149_s4 }
  0x19   : > { %s136_s6 = scalar_lea.sflag [#allocation3], %s786_s25  ;;  %s554_s7 = scalar_lea.hbm %s793_s30, 128 }
  0x1a   : > { %p555_p3 = scmp.ne.s32.totalorder %s793_s30, %s554_s7  ;;  %p556_p5 = pneg %p799_p0 }
  0x1b   : > { %s559_s16 = scalar_lea.hbm %s952_s0, 256  ;;  %p560_p4 = scmp.lt.u32.totalorder %s793_s30, %s952_s0 }
  0x1c   : > { %p557_p6 = pnand %p556_p5, %p555_p3  ;;  %p561_p10 = scmp.lt.u32.totalorder %s559_s16, %s554_s7 }
  0x1d   : > { %p563_p12 = scmp.lt.u32.totalorder %s554_s7, %s793_s30 }
  0x1e   : > { %p558_p7 = pneg %p557_p6  ;;  %p562_p13 = por %p561_p10, %p560_p4 }
  0x20   : > { %p564_p1 = por %p563_p12, %p562_p13 }
  0x22   : > { %p565_p2 = pnand %p564_p1, %p558_p7 }
  0x24   : > { %568 = shalt.err (!%p565_p2)
}
  0x25   : > { %s569_s20 = scalar_lea.vmem %s795_s4, 128  ;;  %s702_s26 = smov [#allocation2]  }
  0x26   : > { %p570_p3 = scmp.ne.s32.totalorder %s795_s4, %s569_s20  ;;  %s574_s27 = sshll.u32 %s702_s26, 4  ;;  %s575_s27 = int_to_ptr.vmem [resolvable:$false] %s574_s27 }
  0x27   : > { %s576_s28 = scalar_lea.vmem %s575_s27, 256  ;;  %p577_p9 = scmp.lt.s32.totalorder %s795_s4, %s575_s27 }
  0x28   : > { %p572_p6 = pnand %p570_p3, %p556_p5  ;;  %p578_p4 = scmp.lt.s32.totalorder %s576_s28, %s569_s20 }
  0x2a   : > { %p573_p11 = pneg %p572_p6  ;;  %p579_p10 = por %p578_p4, %p577_p9 }
  0x2c   : > { %p580_p12 = pnand %p579_p10, %p573_p11 }
  0x2e   : > { %583 = shalt.err (!%p580_p12)
}
  0x2f   : > { %488 = dma.hbm_to_vmem [thread:$0]  (!%p799_p0), %s793_s30, 128, %s795_s4, %s136_s6  }
  0x30   : > { %p962_p1 = scmp.lt.s32.totalorder %s700_s14, 3  ;;  %p963_p2 = scmp.ge.s32.totalorder %s700_s14, 1 }
  0x31   : > { %s468_s3 = sshll.u32 %s786_s25, 1  ;;  %s478_s7 = sshll.u32 %s696_s13, 5 }
  0x32   : > { %p835_p7 = pnand %p963_p2, %p962_p1  ;;  %s844_s16 = scalar_lea.hbm %s953_s1, %s478_s7 }
  0x33   : > { %s160_s18 = scalar_lea.vmem [#allocation5], %s468_s3  ;;  %s157_s30 = scalar_lea.sflag [#allocation6], %s786_s25 }
  0x34   : > { %s964_s29 = scalar_select %p835_p7, 1, 0 }
  0x35   : > { %s170_s19 = sshll.u32 %s160_s18, 4  ;;  %s584_s4 = scalar_lea.hbm %s844_s16, 32  ;;  %s171_s19 = int_to_ptr.vmem [resolvable:$true] %s170_s19 }
  0x36   : > { %p585_p9 = scmp.ne.s32.totalorder %s844_s16, %s584_s4  ;;  %s589_s26 = scalar_lea.hbm %s953_s1, 64 }
  0x37   : > { %p590_p3 = scmp.lt.u32.totalorder %s844_s16, %s953_s1  ;;  %p591_p6 = scmp.lt.u32.totalorder %s589_s26, %s584_s4 }
  0x38   : > { %p587_p11 = pnand %p585_p9, %p556_p5  ;;  %p593_p10 = scmp.lt.u32.totalorder %s584_s4, %s844_s16 }
  0x39   : > { %p592_p4 = por %p591_p6, %p590_p3 }
  0x3a   : > { %p588_p13 = pneg %p587_p11 }
  0x3b   : > { %p594_p12 = por %p593_p10, %p592_p4 }
  0x3d   : > { %p595_p1 = pnand %p594_p12, %p588_p13 }
  0x3f   : > { %598 = shalt.err (!%p595_p1)
}
  0x40   : > { %s599_s25 = scalar_lea.vmem %s171_s19, 32  ;;  %s703_s3 = smov [#allocation5]  }
  0x41   : > { %p600_p2 = scmp.ne.s32.totalorder %s171_s19, %s599_s25  ;;  %s604_s7 = sshll.u32 %s703_s3, 4  ;;  %s605_s7 = int_to_ptr.vmem [resolvable:$false] %s604_s7 }
  0x42   : > { %s606_s8 = scalar_lea.vmem %s605_s7, 64  ;;  %p607_p8 = scmp.lt.s32.totalorder %s171_s19, %s605_s7 }
  0x43   : > { %p602_p9 = pnand %p600_p2, %p556_p5  ;;  %p608_p7 = scmp.lt.s32.totalorder %s606_s8, %s599_s25 }
  0x45   : > { %p603_p11 = pneg %p602_p9  ;;  %p609_p3 = por %p608_p7, %p607_p8 }
  0x47   : > { %p610_p6 = pnand %p609_p3, %p603_p11 }
  0x49   : > { %613 = shalt.err (!%p610_p6)
}
  0x4a   : > { %491 = dma.hbm_to_vmem [thread:$0]  (!%p799_p0), %s844_s16, 32, %s171_s19, %s157_s30  }
  0x4b   : > { %p965_p13 = scmp.ne.s32.totalorder %s964_s29, 0 }
  0x4c   : > { %s869_s15 = sand.u32 (!%p965_p13), 1, %s684_s10   ;;  %p966_p5 = scmp.ne.s32.totalorder (!%p965_p13), %s958_s21, 0 }
  0x4d   : > { %179 = sbr.rel (%p965_p13) target bundleno = 322 (0x142), region = 28  ;;  %s472_s18 = sshll.u32 (!%p965_p13), %s869_s15, 3 }
  0x4e   : > { %s182_s4 = scalar_lea.sflag (!%p965_p13), [#allocation3], %s869_s15  ;;  %s185_s6 = scalar_lea.vmem (!%p965_p13), [#allocation2], %s472_s18 }
  0x54   : > { %667 = dma.done.wait (%p966_p5), %s182_s4, 128  }
  0x55   : > { %669 = vsyncadd (%p966_p5), %s182_s4, 4294967168  ;;  %s473_s5 = sshll.u32 %s869_s15, 1  ;;  %s191_s29 = scalar_lea.sflag [#allocation6], %s869_s15 }
  0x56   : > { %s194_s16 = scalar_lea.vmem [#allocation5], %s473_s5 }
  0x57   : > { %671 = dma.done.wait (%p966_p5), %s191_s29, 32  }
  0x58   : > { %673 = vsyncadd (%p966_p5), %s191_s29, 4294967264  ;;  %vm226_vm0 = vcmask 1043456   ;;  %v221_v0 = vld [vmem:[%s185_s6] sm:$0xff]  ;;  %v271_v15 = vlaneseq  ;;  %v222_v22 = vld [vmem:[%s194_s16] sm:$0x3]  ;;  %vm332_vm4 = vcmask 1040384  }
  0x59   : > { %v224_v1 = vcombine.high %v221_v0, %v221_v0  ;;  %v227_v2 = vsel %vm226_vm0, %v221_v0, -inf  ;;  %v704_v56 = vmov 1966171168   ;;  %vm301_vm3 = vcmp.ne.s32.totalorder %v222_v22, 4294967295  ;;  %s474_s21 = sshll.u32 %s692_s12, 4  ;;  %s218_s19 = scalar_lea.vmem [#allocation7], %s869_s15 }
  0x5a   : > { %v228_v3 = vrot.slane %v227_v2, 4  ;;  %v886_v18 = vshrl.u32 %v271_v15, 7  ;;  %v306_v57 = vunpack.c.l.s4 %v704_v56  ;;  %s357_s30 = sshll.u32 %s218_s19, 4  ;;  %s903_s27 = scalar_lea.hbm %s954_s2, %s474_s21  ;;  %s905_s30 = int_to_ptr.vmem [resolvable:$true] %s357_s30 }
  0x5b   : > { %v234_v4 = vsel %vm226_vm0, %v224_v1, -inf  ;;  %s344_s28 = scalar_lea.sflag [#allocation4], %s869_s15  ;;  %s614_s25 = scalar_lea.vmem %s905_s30, 16 }
  0x5c   : > { %v229_v5 = vmax.f32 %v227_v2, %v228_v3  ;;  %v235_v6 = vrot.slane %v234_v4, 4  ;;  %v275_v21 = vsub.s32 0, %v886_v18  ;;  %v279_v23 = vsub.s32 1, %v886_v18  ;;  %p615_p8 = scmp.ne.s32.totalorder %s905_s30, %s614_s25  ;;  %p967_p0 = scmp.ne.s32.totalorder %s959_s22, 0 }
  0x5d   : > { %s705_s12 = smov [#allocation7]  }
  0x5e   : > { %v230_v7 = vrot.slane %v229_v5, 2  ;;  %v236_v8 = vmax.f32 %v234_v4, %v235_v6  ;;  %v276_v24 = vrot.slane %v222_v22, %v275_v21  ;;  %v280_v25 = vrot.slane %v222_v22, %v279_v23  ;;  %p616_p7 = pnand %p615_p8, %p967_p0  ;;  %s618_s3 = sshll.u32 %s705_s12, 4  ;;  %s619_s3 = int_to_ptr.vmem [resolvable:$false] %s618_s3 }
  0x5f   : > { %s620_s7 = scalar_lea.vmem %s619_s3, 32  ;;  %p621_p10 = scmp.lt.s32.totalorder %s905_s30, %s619_s3 }
  0x60   : > { %v231_v9 = vmax.f32 %v229_v5, %v230_v7  ;;  %v237_v10 = vrot.slane %v236_v8, 2  ;;  %vm281_vm1 = vcmp.eq.s32.totalorder %v886_v18, %v276_v24  ;;  %vm282_vm2 = vcmp.eq.s32.totalorder %v886_v18, %v280_v25  ;;  %p617_p4 = pneg %p616_p7  ;;  %p622_p12 = scmp.lt.s32.totalorder %s620_s7, %s614_s25 }
  0x61   : > { %v283_v26 = vsel %vm281_vm1, %v221_v0, 0.0  ;;  %v284_v30 = vsel %vm282_vm2, %v224_v1, 0.0  ;;  %v307_v1 = vunpack.c.0.s8 %v306_v57 }
  0x62   : > { %v232_v11 = vrot.slane %v231_v9, 1  ;;  %v238_v12 = vmax.f32 %v236_v8, %v237_v10  ;;  %v285_v32 = vsel %vm226_vm0, %v283_v26, 0.0  ;;  %v292_v36 = vsel %vm226_vm0, %v284_v30, 0.0  ;;  %p623_p1 = por %p622_p12, %p621_p10 }
  0x63   : > { %v286_v37 = vrot.slane %v285_v32, 4  ;;  %v293_v40 = vrot.slane %v292_v36, 4  ;;  %v310_v5 = vsub.s32 %v307_v1, %v886_v18 }
  0x64   : > { %v233_v13 = vmax.f32 %v231_v9, %v232_v11  ;;  %v239_v14 = vrot.slane %v238_v12, 1  ;;  %p624_p2 = pnand %p623_p1, %p617_p4 }
  0x65   : > { %v287_v43 = vadd.f32 %v286_v37, %v285_v32  ;;  %v294_v46 = vadd.f32 %v293_v40, %v292_v36 }
  0x66   : > { %v240_v16 = vmax.f32 %v238_v12, %v239_v14 }
  0x67   : > { %v288_v49 = vrot.slane %v287_v43, 2  ;;  %v295_v51 = vrot.slane %v294_v46, 2 }
  0x68   : > { %v243_v17 = vcombine.low %v233_v13, %v240_v16 }
  0x69   : > { %v289_v52 = vadd.f32 %v288_v49, %v287_v43  ;;  %v296_v53 = vadd.f32 %v295_v51, %v294_v46 }
  0x6a   : > { %v245_v19 = vsub.f32 %v221_v0, %v243_v17 }
  0x6b   : > { %v290_v54 = vrot.slane %v289_v52, 1  ;;  %v297_v55 = vrot.slane %v296_v53, 1 }
  0x6c   : > { %v246_v20 = vmul.f32 1.442695, %v245_v19 }
  0x6d   : > { %v291_v60 = vadd.f32 %v290_v54, %v289_v52  ;;  %v298_v0 = vadd.f32 %v297_v55, %v296_v53 }
  0x6e   : > { %548 = vpow2.f32 %v246_v20 }
  0x78   : > { %v549_v27 = vpop.eup %548 }
  0x79   : > { %v249_v28 = vcombine.high %v549_v27, %v549_v27  ;;  %v251_v29 = vsel %vm226_vm0, %v549_v27, 0.0 }
  0x7a   : > { %v252_v31 = vrot.slane %v251_v29, 4 }
  0x7b   : > { %v258_v33 = vsel %vm226_vm0, %v249_v28, 0.0 }
  0x7c   : > { %v253_v34 = vadd.f32 %v252_v31, %v251_v29  ;;  %v259_v35 = vrot.slane %v258_v33, 4 }
  0x7e   : > { %v254_v38 = vrot.slane %v253_v34, 2  ;;  %v260_v39 = vadd.f32 %v259_v35, %v258_v33 }
  0x80   : > { %v255_v41 = vadd.f32 %v254_v38, %v253_v34  ;;  %v261_v42 = vrot.slane %v260_v39, 2 }
  0x82   : > { %v256_v44 = vrot.slane %v255_v41, 1  ;;  %v262_v45 = vadd.f32 %v261_v42, %v260_v39 }
  0x84   : > { %v257_v47 = vadd.f32 %v256_v44, %v255_v41  ;;  %v263_v48 = vrot.slane %v262_v45, 1 }
  0x86   : > { %v264_v50 = vadd.f32 %v263_v48, %v262_v45  ;;  %550 = vlog2.f32 %v257_v47 }
  0x88   : > { %552 = vlog2.f32 %v264_v50 }
  0x90   : > { %v551_v58 = vpop.eup %550 }
  0x91   : > { %v266_v59 = vmul.f32 0.6931472, %v551_v58 }
  0x92   : > { %v553_v61 = vpop.eup %552 }
  0x93   : > { %v268_v62 = vmul.f32 0.6931472, %v553_v61  ;;  %v269_v63 = vadd.f32 %v266_v59, %v233_v13 }
  0x95   : > { %v270_v2 = vadd.f32 %v268_v62, %v240_v16  ;;  %v299_v3 = vsub.f32 %v269_v63, %v291_v60  ;;  %v339_v16 = vand.u32 127, %v271_v15 }
  0x97   : > { %v300_v4 = vsub.f32 %v270_v2, %v298_v0  ;;  %vm340_vm5 = vcmp.eq.s32.totalorder %v339_v16, 0 }
  0x99   : > { %v304_v6 = vcombine.low %v299_v3, %v300_v4 }
  0x9b   : > { %v311_v7 = vrot.slane %v304_v6, %v310_v5 }
  0x9d   : > { %v318_v8 = vrot.slane %v311_v7, %v310_v5 }
  0x9f   : > { %v320_v9 = vsel %vm301_vm3, %v318_v8, 0.0 }
  0xa0   : > { %v325_v10 = vrot.slane %v320_v9, %v275_v21  ;;  %v329_v11 = vrot.slane %v320_v9, %v279_v23 }
  0xa2   : > { %v333_v12 = vsel %vm332_vm4, %v325_v10, 0.0  ;;  %v334_v13 = vsel %vm332_vm4, %v329_v11, 0.0 }
  0xa3   : > { %v335_v14 = vadd.f32 %v334_v13, %v333_v12 }
  0xa5   : > { %336 = vadd.xlane.f32.xlu0 %v335_v14 }
 0x132   : > { %v337_v17 = vpop.xlane.xlu0 %336 }
 0x133   : > { %v341_v18 = vsel %vm340_vm5, %v337_v17, 0.0 }
 0x134   : > { %342 = vst [vmem:[%s218_s19] sm:$0x1] %v341_v18 }
 0x135   : > { %627 = shalt.err (!%p624_p2)
}
 0x136   : > { %s628_s8 = scalar_lea.hbm %s903_s27, 16  ;;  %s632_s4 = scalar_lea.hbm %s954_s2, 32 }
 0x137   : > { %p629_p9 = scmp.ne.s32.totalorder %s903_s27, %s628_s8  ;;  %p633_p6 = scmp.lt.u32.totalorder %s903_s27, %s954_s2 }
 0x138   : > { %p634_p13 = scmp.lt.u32.totalorder %s632_s4, %s628_s8  ;;  %p636_p8 = scmp.lt.u32.totalorder %s628_s8, %s903_s27 }
 0x139   : > { %p630_p11 = pnand %p629_p9, %p967_p0 }
 0x13a   : > { %p635_p5 = por %p634_p13, %p633_p6 }
 0x13b   : > { %p631_p3 = pneg %p630_p11 }
 0x13c   : > { %p637_p7 = por %p636_p8, %p635_p5 }
 0x13e   : > { %p638_p4 = pnand %p637_p7, %p631_p3 }
 0x140   : > { %641 = shalt.err (!%p638_p4)
}
 0x141   : > { %483 = dma.vmem_to_hbm [thread:$0]  (%p967_p0), %s905_s30, 16, %s903_s27, %s344_s28  }
 0x142 PF: > { %s369_s29 = sand.u32 1, %s680_s9   ;;  %p968_p10 = scmp.ne.s32.totalorder %s960_s24, 0 }
 0x143   : > { %p969_p12 = scmp.ge.s32.totalorder %s700_s14, 2  ;;  %s370_s16 = scalar_lea.sflag [#allocation4], %s369_s29 }
 0x145   : > { %p493_p1 = pnand %p969_p12, %p968_p10 }
 0x147   : > { %675 = dma.done.wait (!%p493_p1), %s370_s16, 16  }
 0x148   : > { %677 = vsyncadd (!%p493_p1), %s370_s16, 4294967280  ;;  %s21_s14 = sadd.s32 1, %s700_s14   ;;  %s970_s9 = smov %s684_s10 }
 0x149   : > { %p18_p2 = scmp.ge.s32.totalorder %s21_s14, 4   ;;  %s971_s10 = smov %s688_s11 }
 0x14a   : > { %s972_s11 = smov %s777_s23  ;;  %s973_s12 = smov %s696_s13 }
 0x14b   : > { %s974_s13 = smov %s976_s17  ;;  %20 = sbr.rel (!%p18_p2) target bundleno = 8 (0x8), region = 86 }
 0x152   :  { %374 = vsyncpa [#allocation3], 1 }
 0x153   :  { %376 = vsyncpa [#allocation3 + $0x1], 1 }
 0x154   :  { %377 = vsyncpa [#allocation6], 1 }
 0x155   :  { %379 = vsyncpa [#allocation6 + $0x1], 1 }
 0x156   :  { %380 = vsyncpa [#allocation4], 1 }
 0x157   :  { %382 = vsyncpa [#allocation4 + $0x1], 1 }

</bundles_post_ra>
